<compile_context>
chip_gen: v5e
topology: v5e:2x2
jax: 0.10.0
libtpu: 0.0.40
codegen_flags: <defaults>
</compile_context>

<pallas_src>
import functools

import jax
import jax.numpy as jnp
from jax.experimental import pallas as pl
from jax.experimental.pallas import tpu as pltpu


def _sobel_weights(tag: str):
    # Deterministic buffer init, identical to the PyTorch module's __init__.
    if tag == "x":
        return [[-1.0 / 8, 0.0, 1.0 / 8],
                [-2.0 / 8, 0.0, 2.0 / 8],
                [-1.0 / 8, 0.0, 1.0 / 8]]
    elif tag == "y":
        return [[-1.0 / 8, -2.0 / 8, -1.0 / 8],
                [0.0, 0.0, 0.0],
                [1.0 / 8, 2.0 / 8, 1.0 / 8]]
    raise NameError("Do not know this tag for Sobel Kernel : {}".format(tag))


def _sobel_kernel(x_ref, o_ref, pad_ref, *, tag, H, W):
    # x_ref  : (P, H, W)     unpadded input planes for this grid step
    # o_ref  : (P, H, W)     output planes
    # pad_ref: (P, H+2, W+2) f32 VMEM scratch = zero-padded planes
    #
    # Zero the scratch every step (cheap, VMEM-local, and safe even if the
    # plane axis is sharded across TensorCores), then write the interior.
    pad_ref[...] = jnp.zeros_like(pad_ref)
    # f32 accumulation (exact /8 weights). For bf16 inputs on v6e/v7x one could
    # accumulate in bf16 to halve vreg pressure; f32 matches PyTorch closely.
    pad_ref[:, 1:H + 1, 1:W + 1] = x_ref[...].astype(jnp.float32)

    if tag == "x":
        # Separable Sobel-x: horizontal [-1, 0, 1]/8, then vertical [1, 2, 1].
        h = (pad_ref[:, :, 2:W + 2] - pad_ref[:, :, 0:W]) * 0.125   # (P, H+2, W)
        out = h[:, 0:H, :] + 2.0 * h[:, 1:H + 1, :] + h[:, 2:H + 2, :]
    else:
        # Separable Sobel-y: vertical [-1, 0, 1]/8, then horizontal [1, 2, 1].
        v = (pad_ref[:, 2:H + 2, :] - pad_ref[:, 0:H, :]) * 0.125   # (P, H, W+2)
        out = v[:, :, 0:W] + 2.0 * v[:, :, 1:W + 1] + v[:, :, 2:W + 2]

    o_ref[...] = out.astype(o_ref.dtype)


def sobel_conv(x, tag="x"):
    """Equivalent of SobelConv(tag, dtype).forward(x) for NCHW float input."""
    if tag not in ("x", "y"):
        raise NameError("Do not know this tag for Sobel Kernel : {}".format(tag))
    N, C, H, W = x.shape
    NC = N * C
    dtype = x.dtype
    itemsize = jnp.dtype(dtype).itemsize

    # Free (contiguous) reshape -- no extra HBM pass.
    x2 = x.reshape(NC, H, W)

    # Batch P planes per grid step so each block is ~2 MB: large DMAs, few
    # grid steps, and (in+out double-buffered + scratch) ~12 MB of VMEM,
    # which fits every generation including v7x's 64 MiB.
    target_block_bytes = 2 * 1024 * 1024
    P = int(max(1, min(NC, target_block_bytes // max(1, H * W * itemsize))))
    grid = (pl.cdiv(NC, P),)

    kernel = functools.partial(_sobel_kernel, tag=tag, H=H, W=W)

    # HBM-bound kernel: ~6 flops/element, bytes = read x + write out.
    flops = 6 * NC * H * W
    bytes_accessed = 2 * NC * H * W * itemsize

    out = pl.pallas_call(
        kernel,
        out_shape=jax.ShapeDtypeStruct((NC, H, W), dtype),
        grid_spec=pltpu.PrefetchScalarGridSpec(
            num_scalar_prefetch=0,
            grid=grid,
            in_specs=[pl.BlockSpec((P, H, W), lambda i: (i, 0, 0))],
            out_specs=pl.BlockSpec((P, H, W), lambda i: (i, 0, 0)),
            scratch_shapes=[pltpu.VMEM((P, H + 2, W + 2), jnp.float32)],
        ),
        compiler_params=pltpu.CompilerParams(
            # On v7x, pltpu.CORE_PARALLEL on this axis would shard plane-batches
            # across both TensorCores; "parallel" is the portable safe choice.
            dimension_semantics=("parallel",),
            vmem_limit_bytes=64 * 1024 * 1024,
        ),
        cost_estimate=pl.CostEstimate(
            flops=flops, transcendentals=0, bytes_accessed=bytes_accessed),
    )(x2)

    return out.reshape(N, C, H, W)


def _reference_sobel(x, tag):
    # Pure-JAX reference (depthwise conv, padding=1) for verification.
    w = jnp.asarray(_sobel_weights(tag), dtype=x.dtype)  # (3, 3)
    C = x.shape[1]
    weight = jnp.broadcast_to(w[None, None, :, :], (C, 1, 3, 3))
    return jax.lax.conv_general_dilated(
        x, weight,
        window_strides=(1, 1),
        padding=((1, 1), (1, 1)),
        dimension_numbers=("NCHW", "OIHW", "NCHW"),
        feature_group_count=C,
    )


if __name__ == "__main__":
    key = jax.random.PRNGKey(0)
    N, C, H, W = 2, 4, 16, 16
    x = jax.random.normal(key, (N, C, H, W), dtype=jnp.float32)

    out_x = jax.block_until_ready(sobel_conv(x, tag="x"))
    out_y = jax.block_until_ready(sobel_conv(x, tag="y"))

    ref_x = _reference_sobel(x, "x")
    ref_y = _reference_sobel(x, "y")
    assert out_x.shape == (N, C, H, W) and out_x.dtype == x.dtype
    assert jnp.allclose(out_x, ref_x, atol=1e-5, rtol=1e-5)
    assert jnp.allclose(out_y, ref_y, atol=1e-5, rtol=1e-5)

    print("KERNEL_OK")
</pallas_src>

<mosaic_0001>
module attributes {stable_mosaic.version = 11 : i64} {
  func.func @_sobel_kernel(%arg0: i32, %arg1: memref<8x16x16xf32, #tpu.memory_space<vmem>>, %arg2: memref<8x16x16xf32, #tpu.memory_space<vmem>>, %arg3: memref<8x18x18xf32, #tpu.memory_space<vmem>>) attributes {dimension_semantics = [#tpu.dimension_semantics<parallel>], iteration_bounds = array<i64: 1>, scalar_prefetch = 0 : i64, scratch_operands = 1 : i64, tpu.core_type = #tpu.core_type<tc>, window_params = [{transform_indices = @transform_0, window_bounds = array<i64: 8, 16, 16>}, {transform_indices = @transform_1, window_bounds = array<i64: 8, 16, 16>}]} {
    %cst = arith.constant 0.000000e+00 : f32
    %0 = vector.broadcast %cst : f32 to vector<8x18x18xf32>
    %c0 = arith.constant 0 : index
    %c0_0 = arith.constant 0 : index
    %c0_1 = arith.constant 0 : index
    %1 = vector.load %arg3[%c0, %c0_0, %c0_1] : memref<8x18x18xf32, #tpu.memory_space<vmem>>, vector<8x18x18xf32>
    tpu.vector_store %arg3[%c0, %c0_0, %c0_1], %0 {strides = array<i32>} : memref<8x18x18xf32, #tpu.memory_space<vmem>>, vector<8x18x18xf32>,
    %c0_2 = arith.constant 0 : index
    %c0_3 = arith.constant 0 : index
    %c0_4 = arith.constant 0 : index
    %2 = vector.load %arg1[%c0_2, %c0_3, %c0_4] : memref<8x16x16xf32, #tpu.memory_space<vmem>>, vector<8x16x16xf32>
    %c0_5 = arith.constant 0 : index
    %c1 = arith.constant 1 : index
    %c1_6 = arith.constant 1 : index
    %3 = vector.load %arg3[%c0_5, %c1, %c1_6] : memref<8x18x18xf32, #tpu.memory_space<vmem>>, vector<8x16x16xf32>
    tpu.vector_store %arg3[%c0_5, %c1, %c1_6], %2 {strides = array<i32>} : memref<8x18x18xf32, #tpu.memory_space<vmem>>, vector<8x16x16xf32>,
    %c0_7 = arith.constant 0 : index
    %c0_8 = arith.constant 0 : index
    %c2 = arith.constant 2 : index
    %4 = vector.load %arg3[%c0_7, %c0_8, %c2] : memref<8x18x18xf32, #tpu.memory_space<vmem>>, vector<8x18x16xf32>
    %c0_9 = arith.constant 0 : index
    %c0_10 = arith.constant 0 : index
    %c0_11 = arith.constant 0 : index
    %5 = vector.load %arg3[%c0_9, %c0_10, %c0_11] : memref<8x18x18xf32, #tpu.memory_space<vmem>>, vector<8x18x16xf32>
    %6 = arith.subf %4, %5 : vector<8x18x16xf32>
    %cst_12 = arith.constant 1.250000e-01 : f32
    %7 = vector.broadcast %cst_12 : f32 to vector<8x18x16xf32>
    %8 = arith.mulf %6, %7 : vector<8x18x16xf32>
    %9 = vector.extract_strided_slice %8 {offsets = [0, 0, 0], sizes = [8, 16, 16], strides = [1, 1, 1]} : vector<8x18x16xf32> to vector<8x16x16xf32>
    %10 = vector.extract_strided_slice %8 {offsets = [0, 1, 0], sizes = [8, 16, 16], strides = [1, 1, 1]} : vector<8x18x16xf32> to vector<8x16x16xf32>
    %cst_13 = arith.constant 2.000000e+00 : f32
    %11 = vector.broadcast %cst_13 : f32 to vector<8x16x16xf32>
    %12 = arith.mulf %11, %10 : vector<8x16x16xf32>
    %13 = arith.addf %9, %12 : vector<8x16x16xf32>
    %14 = vector.extract_strided_slice %8 {offsets = [0, 2, 0], sizes = [8, 16, 16], strides = [1, 1, 1]} : vector<8x18x16xf32> to vector<8x16x16xf32>
    %15 = arith.addf %13, %14 : vector<8x16x16xf32>
    %c0_14 = arith.constant 0 : index
    %c0_15 = arith.constant 0 : index
    %c0_16 = arith.constant 0 : index
    %16 = vector.load %arg2[%c0_14, %c0_15, %c0_16] : memref<8x16x16xf32, #tpu.memory_space<vmem>>, vector<8x16x16xf32>
    tpu.vector_store %arg2[%c0_14, %c0_15, %c0_16], %15 {strides = array<i32>} : memref<8x16x16xf32, #tpu.memory_space<vmem>>, vector<8x16x16xf32>,
    return
  }
  func.func @transform_0(%arg0: i32) -> (i32, i32, i32) {
    %c0_i32 = arith.constant 0 : i32
    %c0_i32_0 = arith.constant 0 : i32
    %c0_i32_1 = arith.constant 0 : i32
    return %arg0, %c0_i32, %c0_i32_0 : i32, i32, i32
  }
  func.func @transform_1(%arg0: i32) -> (i32, i32, i32) {
    %c0_i32 = arith.constant 0 : i32
    %c0_i32_0 = arith.constant 0 : i32
    %c0_i32_1 = arith.constant 0 : i32
    return %arg0, %c0_i32, %c0_i32_0 : i32, i32, i32
  }
}

</mosaic_0001>

<bundles_post_ra>
// kernel: tpu_custom_call.1
= control target key start
LH: loop header
LB: loop body
LE: loop exit
PB: predicated region body
PF: predicated region fallthrough
CT: control target
= control target key end

     0   :  { %6 = vsyncpa [#allocation4], 0  ;;  %s978_s0 = inlined_call_operand.hbm [shape: f32[8,16,16], index: 0, kind: input, shape index: {}]   ;;  %s979_s1 = inlined_call_operand.hbm [shape: f32[8,16,16], index: 1, kind: output, shape index: {}]  }
   0x1   :  { %7 = vsyncpa [#allocation5], 0  ;;  %s12_s8 = sshll.u32 %s978_s0, 4  ;;  %s694_s9 = smov [#allocation3]   ;;  %s13_s8 = int_to_ptr.hbm [resolvable:$true] %s12_s8 }
   0x2   :  { %s14_s10 = sshll.u32 %s694_s9, 4  ;;  %s695_s11 = smov 128   ;;  %s15_s10 = int_to_ptr.vmem [resolvable:$true] %s14_s10 }
   0x3   :  { %s696_s12 = smov 8  }
   0x4   :  { %20 = dma.hbm_to_vmem [thread:$0]  %s13_s8, 2048, %s15_s10, [#allocation4], %s695_s11, %s695_s11, %s696_s12  }
   0x5   :  { %690 = dma.done.wait [#allocation4], 2048  }
   0x6   :  { %691 = vsyncadd [#allocation4], 4294965248  ;;  %v53_v0 = vld [vmem:[#allocation3 + $0x10] sm:$0xff]  ;;  %v51_v1 = vld [vmem:[#allocation3] sm:$0xff]  ;;  %s697_s13 = smov 1   ;;  %vm25_vm0 = vcmask 146432  }
   0x7   :  { %87 = vrot.lane.b32.xlu1 %v53_v0, %s697_s13  ;;  %83 = vrot.lane.b32.xlu0 %v51_v1, %s697_s13  ;;  %v55_v2 = vld [vmem:[#allocation3 + $0x20] sm:$0xff]  ;;  %v54_v3 = vld [vmem:[#allocation3 + $0x18] sm:$0xff]  ;;  %v52_v4 = vld [vmem:[#allocation3 + $0x8] sm:$0xff]  ;;  %v698_v6 = vmov 0.0   ;;  %vm28_vm1 = vcmask 140288   ;;  %vm131_vm2 = vcmask 138248  }
   0x8   :  { %91 = vrot.lane.b32.xlu2 %v55_v2, %s697_s13  ;;  %v56_v5 = vld [vmem:[#allocation3 + $0x28] sm:$0xff]  ;;  %30 = vst.msk [vmem:[#allocation2 + $0x18] sm:$0xff] %vm25_vm0, %v698_v6  ;;  %v57_v7 = vld [vmem:[#allocation3 + $0x30] sm:$0xff]  ;;  %v58_v8 = vld [vmem:[#allocation3 + $0x38] sm:$0xff]  ;;  %s699_s0 = smov 2   ;;  %vm364_vm3 = vcmask 1046528  }
   0x9   :  { %31 = vst.msk [vmem:[#allocation2 + $0x20] sm:$0xff] %vm25_vm0, %v698_v6  ;;  %v59_v9 = vld [vmem:[#allocation3 + $0x40] sm:$0xff]  ;;  %v61_v10 = vld [vmem:[#allocation3 + $0x50] sm:$0xff]  ;;  %v60_v11 = vld [vmem:[#allocation3 + $0x48] sm:$0xff]  ;;  %vm461_vm4 = vcmask 1045504   ;;  %s700_s14 = smov 126  }
   0xa   :  { %26 = vst.msk [vmem:[#allocation2] sm:$0xff] %vm25_vm0, %v698_v6  ;;  %v62_v12 = vld [vmem:[#allocation3 + $0x58] sm:$0xff]  ;;  %v63_v13 = vld [vmem:[#allocation3 + $0x60] sm:$0xff]  ;;  %v64_v14 = vld [vmem:[#allocation3 + $0x68] sm:$0xff]  ;;  %vm598_vm5 = vcmask 130048   ;;  %s701_s15 = smov [#allocation6]  }
   0xb   :  { %27 = vst.msk [vmem:[#allocation2 + $0x8] sm:$0xff] %vm25_vm0, %v698_v6  ;;  %v65_v15 = vld [vmem:[#allocation3 + $0x70] sm:$0xff]  ;;  %v66_v16 = vld [vmem:[#allocation3 + $0x78] sm:$0xff]  ;;  %s619_s16 = sshll.u32 %s701_s15, 4  ;;  %s621_s19 = sshll.u32 %s979_s1, 4  ;;  %s620_s16 = int_to_ptr.vmem [resolvable:$true] %s619_s16  ;;  %s622_s19 = int_to_ptr.hbm [resolvable:$true] %s621_s19 }
   0xc   :  { %33 = vst.msk [vmem:[#allocation2 + $0x30] sm:$0xff] %vm25_vm0, %v698_v6 }
   0xd   :  { %34 = vst.msk [vmem:[#allocation2 + $0x38] sm:$0xff] %vm25_vm0, %v698_v6 }
   0xe   :  { %36 = vst.msk [vmem:[#allocation2 + $0x48] sm:$0xff] %vm25_vm0, %v698_v6 }
   0xf   :  { %89 = vrot.lane.b32.xlu1 %v54_v3, %s697_s13  ;;  %85 = vrot.lane.b32.xlu0 %v52_v4, %s697_s13  ;;  %37 = vst.msk [vmem:[#allocation2 + $0x50] sm:$0xff] %vm25_vm0, %v698_v6 }
  0x10   :  { %93 = vrot.lane.b32.xlu2 %v56_v5, %s697_s13  ;;  %39 = vst.msk [vmem:[#allocation2 + $0x60] sm:$0xff] %vm25_vm0, %v698_v6 }
  0x11   :  { %40 = vst.msk [vmem:[#allocation2 + $0x68] sm:$0xff] %vm25_vm0, %v698_v6 }
  0x12   :  { %42 = vst.msk [vmem:[#allocation2 + $0x78] sm:$0xff] %vm25_vm0, %v698_v6 }
  0x13   :  { %43 = vst.msk [vmem:[#allocation2 + $0x80] sm:$0xff] %vm25_vm0, %v698_v6 }
  0x14   :  { %45 = vst.msk [vmem:[#allocation2 + $0x90] sm:$0xff] %vm25_vm0, %v698_v6 }
  0x15   :  { %46 = vst.msk [vmem:[#allocation2 + $0x98] sm:$0xff] %vm25_vm0, %v698_v6 }
  0x16   :  { %48 = vst.msk [vmem:[#allocation2 + $0xa8] sm:$0xff] %vm25_vm0, %v698_v6 }
  0x17   :  { %95 = vrot.lane.b32.xlu0 %v57_v7, %s697_s13  ;;  %97 = vrot.lane.b32.xlu1 %v58_v8, %s697_s13  ;;  %49 = vst.msk [vmem:[#allocation2 + $0xb0] sm:$0xff] %vm25_vm0, %v698_v6 }
  0x18   :  { %99 = vrot.lane.b32.xlu2 %v59_v9, %s697_s13  ;;  %32 = vst.msk [vmem:[#allocation2 + $0x28] sm:$0x3] %vm28_vm1, %v698_v6 }
  0x19   :  { %29 = vst.msk [vmem:[#allocation2 + $0x10] sm:$0x3] %vm28_vm1, %v698_v6 }
  0x1a   :  { %35 = vst.msk [vmem:[#allocation2 + $0x40] sm:$0x3] %vm28_vm1, %v698_v6 }
  0x1b   :  { %38 = vst.msk [vmem:[#allocation2 + $0x58] sm:$0x3] %vm28_vm1, %v698_v6 }
  0x1c   :  { %41 = vst.msk [vmem:[#allocation2 + $0x70] sm:$0x3] %vm28_vm1, %v698_v6 }
  0x1d   :  { %44 = vst.msk [vmem:[#allocation2 + $0x88] sm:$0x3] %vm28_vm1, %v698_v6 }
  0x1e   :  { %47 = vst.msk [vmem:[#allocation2 + $0xa0] sm:$0x3] %vm28_vm1, %v698_v6 }
  0x1f   :  { %103 = vrot.lane.b32.xlu1 %v61_v10, %s697_s13  ;;  %101 = vrot.lane.b32.xlu0 %v60_v11, %s697_s13  ;;  %50 = vst.msk [vmem:[#allocation2 + $0xb8] sm:$0x3] %vm28_vm1, %v698_v6 }
  0x20   :  { %105 = vrot.lane.b32.xlu2 %v62_v12, %s697_s13 }
  0x27   :  { %107 = vrot.lane.b32.xlu0 %v63_v13, %s697_s13  ;;  %109 = vrot.lane.b32.xlu1 %v64_v14, %s697_s13 }
  0x28   :  { %111 = vrot.lane.b32.xlu2 %v65_v15, %s697_s13 }
  0x2f   :  { %113 = vrot.lane.b32.xlu0 %v66_v16, %s697_s13 }
  0x62   :  { %v92_v17 = vpop.permute.xlu2 %91 }
  0x63   :  { %136 = vst.msk [vmem:[#allocation2 + $0x31] sm:$0xff] %vm131_vm2, %v92_v17 }
  0x6a   :  { %v94_v18 = vpop.permute.xlu2 %93  ;;  %v776_v33 = vld [vmem:[#allocation2 + $0x30] sm:$0xff] }
  0x6b   :  { %137 = vst.msk [vmem:[#allocation2 + $0x39] sm:$0xff] %vm131_vm2, %v94_v18 }
  0x72   :  { %v100_v19 = vpop.permute.xlu2 %99  ;;  %v785_v37 = vld [vmem:[#allocation2 + $0x40] sm:$0x3]  ;;  %v789_v41 = vld [vmem:[#allocation2 + $0x38] sm:$0xff] }
  0x73   :  { %140 = vst.msk [vmem:[#allocation2 + $0x61] sm:$0xff] %vm131_vm2, %v100_v19 }
  0x79   :  { %v88_v20 = vpop.permute.xlu1 %87  ;;  %v84_v21 = vpop.permute.xlu0 %83 }
  0x7a   :  { %134 = vst.msk [vmem:[#allocation2 + $0x19] sm:$0xff] %vm131_vm2, %v88_v20  ;;  %v106_v25 = vpop.permute.xlu2 %105  ;;  %v803_v44 = vld [vmem:[#allocation2 + $0x60] sm:$0xff] }
  0x7b   :  { %132 = vst.msk [vmem:[#allocation2 + $0x1] sm:$0xff] %vm131_vm2, %v84_v21 }
  0x7c   :  { %143 = vst.msk [vmem:[#allocation2 + $0x81] sm:$0xff] %vm131_vm2, %v106_v25 }
  0x81   :  { %v90_v22 = vpop.permute.xlu1 %89  ;;  %v86_v23 = vpop.permute.xlu0 %85  ;;  %v762_v26 = vld [vmem:[#allocation2 + $0x18] sm:$0xff] }
  0x82   :  { %135 = vst.msk [vmem:[#allocation2 + $0x21] sm:$0xff] %vm131_vm2, %v90_v22  ;;  %v756_v24 = vld [vmem:[#allocation2] sm:$0xff]  ;;  %v112_v31 = vpop.permute.xlu2 %111 }
  0x83   :  { %133 = vst.msk [vmem:[#allocation2 + $0x9] sm:$0xff] %vm131_vm2, %v86_v23  ;;  %196 = vrot.lane.b32.xlu1 %v756_v24, %s699_s0  ;;  %v824_v49 = vld [vmem:[#allocation2 + $0x88] sm:$0x3] }
  0x84   :  { %146 = vst.msk [vmem:[#allocation2 + $0xa9] sm:$0xff] %vm131_vm2, %v112_v31 }
  0x89   :  { %v96_v27 = vpop.permute.xlu0 %95  ;;  %v98_v28 = vpop.permute.xlu1 %97  ;;  %v774_v32 = vld [vmem:[#allocation2 + $0x28] sm:$0x3]  ;;  %v152_v36 = vld [vmem:[#allocation2 + $0x20] sm:$0xff] }
  0x8a   :  { %v764_v29 = vld [vmem:[#allocation2 + $0x10] sm:$0x3]  ;;  %v149_v30 = vld [vmem:[#allocation2 + $0x8] sm:$0xff]  ;;  %138 = vst.msk [vmem:[#allocation2 + $0x49] sm:$0xff] %vm131_vm2, %v96_v27 }
  0x8b   :  { %200 = vrot.lane.b32.xlu0 %v764_v29, %s699_s0  ;;  %198 = vrot.lane.b32.xlu2 %v149_v30, %s699_s0  ;;  %139 = vst.msk [vmem:[#allocation2 + $0x51] sm:$0xff] %vm131_vm2, %v98_v28  ;;  %v840_v54 = vld [vmem:[#allocation2 + $0xa8] sm:$0xff] }
  0x8c   :  { %202 = vrot.lane.b32.xlu1 %v762_v26, %s699_s0 }
  0x91   :  { %v104_v34 = vpop.permute.xlu1 %103  ;;  %v102_v35 = vpop.permute.xlu0 %101  ;;  %v787_v38 = vld [vmem:[#allocation2 + $0x48] sm:$0xff] }
  0x92   :  { %142 = vst.msk [vmem:[#allocation2 + $0x79] sm:$0xff] %vm131_vm2, %v104_v34  ;;  %v799_v42 = vld [vmem:[#allocation2 + $0x58] sm:$0x3]  ;;  %v801_v43 = vld [vmem:[#allocation2 + $0x50] sm:$0xff] }
  0x93   :  { %206 = vrot.lane.b32.xlu0 %v774_v32, %s699_s0  ;;  %204 = vrot.lane.b32.xlu2 %v152_v36, %s699_s0  ;;  %141 = vst.msk [vmem:[#allocation2 + $0x69] sm:$0xff] %vm131_vm2, %v102_v35 }
  0x94   :  { %208 = vrot.lane.b32.xlu1 %v776_v33, %s699_s0 }
  0x99   :  { %v108_v39 = vpop.permute.xlu0 %107  ;;  %v110_v40 = vpop.permute.xlu1 %109  ;;  %v816_v48 = vld [vmem:[#allocation2 + $0x78] sm:$0xff]  ;;  %v826_v50 = vld [vmem:[#allocation2 + $0x80] sm:$0xff] }
  0x9a   :  { %144 = vst.msk [vmem:[#allocation2 + $0x91] sm:$0xff] %vm131_vm2, %v108_v39  ;;  %v812_v46 = vld [vmem:[#allocation2 + $0x70] sm:$0x3]  ;;  %v814_v47 = vld [vmem:[#allocation2 + $0x68] sm:$0xff] }
  0x9b   :  { %212 = vrot.lane.b32.xlu0 %v785_v37, %s699_s0  ;;  %210 = vrot.lane.b32.xlu2 %v789_v41, %s699_s0  ;;  %145 = vst.msk [vmem:[#allocation2 + $0x99] sm:$0xff] %vm131_vm2, %v110_v40 }
  0x9c   :  { %214 = vrot.lane.b32.xlu1 %v787_v38, %s699_s0 }
  0xa1   :  { %v114_v45 = vpop.permute.xlu0 %113  ;;  %v828_v51 = vld [vmem:[#allocation2 + $0x90] sm:$0xff] }
  0xa2   :  { %147 = vst.msk [vmem:[#allocation2 + $0xb1] sm:$0xff] %vm131_vm2, %v114_v45  ;;  %v836_v52 = vld [vmem:[#allocation2 + $0xa0] sm:$0x3]  ;;  %v838_v53 = vld [vmem:[#allocation2 + $0x98] sm:$0xff] }
  0xa3   :  { %218 = vrot.lane.b32.xlu0 %v799_v42, %s699_s0  ;;  %216 = vrot.lane.b32.xlu2 %v801_v43, %s699_s0 }
  0xa4   :  { %220 = vrot.lane.b32.xlu1 %v803_v44, %s699_s0 }
  0xa9   :  { %v848_v55 = vld [vmem:[#allocation2 + $0xb8] sm:$0x3]  ;;  %v850_v56 = vld [vmem:[#allocation2 + $0xb0] sm:$0xff] }
  0xab   :  { %224 = vrot.lane.b32.xlu0 %v812_v46, %s699_s0  ;;  %222 = vrot.lane.b32.xlu2 %v814_v47, %s699_s0 }
  0xac   :  { %226 = vrot.lane.b32.xlu1 %v816_v48, %s699_s0 }
  0xb3   :  { %230 = vrot.lane.b32.xlu0 %v824_v49, %s699_s0  ;;  %228 = vrot.lane.b32.xlu2 %v826_v50, %s699_s0 }
  0xb4   :  { %232 = vrot.lane.b32.xlu1 %v828_v51, %s699_s0 }
  0xbb   :  { %236 = vrot.lane.b32.xlu0 %v836_v52, %s699_s0  ;;  %234 = vrot.lane.b32.xlu2 %v838_v53, %s699_s0 }
  0xbc   :  { %238 = vrot.lane.b32.xlu1 %v840_v54, %s699_s0 }
  0xc3   :  { %242 = vrot.lane.b32.xlu0 %v848_v55, %s699_s0  ;;  %240 = vrot.lane.b32.xlu2 %v850_v56, %s699_s0 }
  0xe5   :  { %v199_v57 = vpop.permute.xlu2 %198 }
  0xe6   :  { %v269_v59 = vsub.f32 %v149_v30, %v199_v57 }
  0xe8   :  { %v293_v60 = vmul.f32 0.125, %v269_v59 }
  0xea   :  { %v317_v0 = vmul.f32 2.0, %v293_v60  ;;  %v463_v9 = vrot.slane %v293_v60, 2 }
  0xec   :  { %v366_v4 = vrot.slane %v317_v0, 1 }
  0xed   :  { %v205_v58 = vpop.permute.xlu2 %204 }
  0xee   :  { %v272_v2 = vsub.f32 %v152_v36, %v205_v58 }
  0xf0   :  { %v857_v7 = vmul.f32 0.125, %v272_v2 }
  0xf2   :  { %v320_v18 = vmul.f32 2.0, %v857_v7 }
  0xf4   :  { %v371_v27 = vrot.slane %v320_v18, 1 }
  0xf5   :  { %v211_v61 = vpop.permute.xlu2 %210  ;;  %v197_v62 = vpop.permute.xlu1 %196 }
  0xf6   :  { %v268_v63 = vsub.f32 %v756_v24, %v197_v62  ;;  %v275_v19 = vsub.f32 %v789_v41, %v211_v61  ;;  %v468_v41 = vrot.slane %v857_v7, 2 }
  0xf8   :  { %v292_v1 = vmul.f32 0.125, %v268_v63  ;;  %v866_v28 = vmul.f32 0.125, %v275_v19 }
  0xfa   :  { %v316_v3 = vmul.f32 2.0, %v292_v1  ;;  %v462_v6 = vrot.slane %v292_v1, 2  ;;  %v323_v61 = vmul.f32 2.0, %v866_v28 }
  0xfc   :  { %v365_v5 = vrot.slane %v316_v3, 1  ;;  %v464_v17 = vsel %vm461_vm4, %v462_v6, %v463_v9 }
  0xfd   :  { %v201_v8 = vpop.permute.xlu0 %200  ;;  %v217_v12 = vpop.permute.xlu2 %216 }
  0xfe   :  { %v367_v10 = vsel %vm364_vm3, %v365_v5, %v366_v4  ;;  %v270_v11 = vsub.f32 %v764_v29, %v201_v8  ;;  %v203_v13 = vpop.permute.xlu1 %202  ;;  %v278_v62 = vsub.f32 %v801_v43, %v217_v12 }
  0xff   :  { %v421_v14 = vadd.f32 %v367_v10, %v292_v1  ;;  %v271_v15 = vsub.f32 %v762_v26, %v203_v13 }
 0x100   :  { %v294_v16 = vmul.f32 0.125, %v270_v11  ;;  %v878_v5 = vmul.f32 0.125, %v278_v62 }
 0x101   :  { %v295_v20 = vmul.f32 0.125, %v271_v15  ;;  %v518_v21 = vadd.f32 %v464_v17, %v421_v14  ;;  %v473_v15 = vrot.slane %v866_v28, 2 }
 0x102   :  { %v318_v22 = vmul.f32 2.0, %v294_v16  ;;  %v465_v25 = vrot.slane %v294_v16, 2  ;;  %v326_v19 = vmul.f32 2.0, %v878_v5 }
 0x103   :  { %v319_v23 = vmul.f32 2.0, %v295_v20  ;;  %550 = vrot.lane.b32.xlu1 %v518_v21, %s700_s14  ;;  %v467_v30 = vrot.slane %v295_v20, 2 }
 0x104   :  { %v368_v24 = vrot.slane %v318_v22, 1  ;;  %v466_v59 = vsel %vm461_vm4, %v463_v9, %v465_v25 }
 0x105   :  { %v370_v26 = vrot.slane %v319_v23, 1  ;;  %v207_v29 = vpop.permute.xlu0 %206  ;;  %v223_v58 = vpop.permute.xlu2 %222  ;;  %v469_v1 = vsel %vm461_vm4, %v467_v30, %v468_v41 }
 0x106   :  { %v273_v31 = vsub.f32 %v774_v32, %v207_v29  ;;  %v209_v34 = vpop.permute.xlu1 %208  ;;  %v369_v35 = vsel %vm364_vm3, %v366_v4, %v368_v24  ;;  %v376_v4 = vrot.slane %v323_v61, 1 }
 0x107   :  { %v372_v36 = vsel %vm364_vm3, %v370_v26, %v371_v27  ;;  %v274_v39 = vsub.f32 %v776_v33, %v209_v34  ;;  %v422_v40 = vadd.f32 %v369_v35, %v293_v60  ;;  %v381_v26 = vrot.slane %v326_v19, 1 }
 0x108   :  { %v423_v45 = vadd.f32 %v372_v36, %v295_v20  ;;  %v297_v57 = vmul.f32 0.125, %v273_v31  ;;  %v281_v20 = vsub.f32 %v814_v47, %v223_v58 }
 0x109   :  { %v298_v32 = vmul.f32 0.125, %v274_v39  ;;  %v519_v63 = vadd.f32 %v466_v59, %v422_v40 }
 0x10a   :  { %v321_v0 = vmul.f32 2.0, %v297_v57  ;;  %v520_v33 = vadd.f32 %v469_v1, %v423_v45  ;;  %v470_v3 = vrot.slane %v297_v57, 2  ;;  %v892_v29 = vmul.f32 0.125, %v281_v20 }
 0x10b   :  { %v322_v2 = vmul.f32 2.0, %v298_v32  ;;  %552 = vrot.lane.b32.xlu2 %v519_v63, %s700_s14  ;;  %v472_v9 = vrot.slane %v298_v32, 2  ;;  %v478_v45 = vrot.slane %v878_v5, 2 }
 0x10c   :  { %v373_v60 = vrot.slane %v321_v0, 1  ;;  %554 = vrot.lane.b32.xlu0 %v520_v33, %s700_s14  ;;  %v471_v18 = vsel %vm461_vm4, %v468_v41, %v470_v3  ;;  %v329_v61 = vmul.f32 2.0, %v892_v29 }
 0x10d   :  { %v375_v6 = vrot.slane %v322_v2, 1  ;;  %v213_v8 = vpop.permute.xlu0 %212  ;;  %v229_v23 = vpop.permute.xlu2 %228  ;;  %v474_v24 = vsel %vm461_vm4, %v472_v9, %v473_v15 }
 0x10e   :  { %v276_v43 = vsub.f32 %v785_v37, %v213_v8  ;;  %v215_v10 = vpop.permute.xlu1 %214  ;;  %v374_v11 = vsel %vm364_vm3, %v371_v27, %v373_v60  ;;  %v284_v62 = vsub.f32 %v826_v50, %v229_v23  ;;  %v386_v60 = vrot.slane %v329_v61, 1 }
 0x10f   :  { %v377_v12 = vsel %vm364_vm3, %v375_v6, %v376_v4  ;;  %v277_v13 = vsub.f32 %v787_v38, %v215_v10  ;;  %v424_v14 = vadd.f32 %v374_v11, %v857_v7  ;;  %v483_v10 = vrot.slane %v892_v29, 2 }
 0x110   :  { %v425_v16 = vadd.f32 %v377_v12, %v298_v32  ;;  %v300_v17 = vmul.f32 0.125, %v276_v43  ;;  %v906_v3 = vmul.f32 0.125, %v284_v62 }
 0x111   :  { %v301_v37 = vmul.f32 0.125, %v277_v13  ;;  %v521_v21 = vadd.f32 %v471_v18, %v424_v14 }
 0x112   :  { %v324_v22 = vmul.f32 2.0, %v300_v17  ;;  %v522_v38 = vadd.f32 %v474_v24, %v425_v16  ;;  %v475_v27 = vrot.slane %v300_v17, 2  ;;  %v332_v18 = vmul.f32 2.0, %v906_v3 }
 0x113   :  { %v325_v25 = vmul.f32 2.0, %v301_v37  ;;  %556 = vrot.lane.b32.xlu1 %v521_v21, %s700_s14  ;;  %v477_v47 = vrot.slane %v301_v37, 2 }
 0x114   :  { %v378_v7 = vrot.slane %v324_v22, 1  ;;  %558 = vrot.lane.b32.xlu2 %v522_v38, %s700_s14  ;;  %v476_v59 = vsel %vm461_vm4, %v473_v15, %v475_v27 }
 0x115   :  { %v380_v30 = vrot.slane %v325_v25, 1  ;;  %v219_v31 = vpop.permute.xlu0 %218  ;;  %v479_v0 = vsel %vm461_vm4, %v477_v47, %v478_v45  ;;  %v235_v33 = vpop.permute.xlu2 %234 }
 0x116   :  { %v279_v34 = vsub.f32 %v799_v42, %v219_v31  ;;  %v221_v35 = vpop.permute.xlu1 %220  ;;  %v379_v36 = vsel %vm364_vm3, %v376_v4, %v378_v7  ;;  %v287_v14 = vsub.f32 %v838_v53, %v235_v33  ;;  %v391_v53 = vrot.slane %v332_v18, 1 }
 0x117   :  { %v382_v39 = vsel %vm364_vm3, %v380_v30, %v381_v26  ;;  %v280_v40 = vsub.f32 %v803_v44, %v221_v35  ;;  %v426_v41 = vadd.f32 %v379_v36, %v866_v28  ;;  %v488_v31 = vrot.slane %v906_v3, 2 }
 0x118   :  { %v427_v57 = vadd.f32 %v382_v39, %v301_v37  ;;  %v303_v58 = vmul.f32 0.125, %v279_v34 }
 0x119   :  { %v304_v42 = vmul.f32 0.125, %v280_v40  ;;  %v523_v32 = vadd.f32 %v476_v59, %v426_v41 }
 0x11a   :  { %v327_v63 = vmul.f32 2.0, %v303_v58  ;;  %v524_v44 = vadd.f32 %v479_v0, %v427_v57  ;;  %v480_v2 = vrot.slane %v303_v58, 2 }
 0x11b   :  { %v328_v1 = vmul.f32 2.0, %v304_v42  ;;  %560 = vrot.lane.b32.xlu0 %v523_v32, %s700_s14  ;;  %v482_v50 = vrot.slane %v304_v42, 2 }
 0x11c   :  { %v383_v28 = vrot.slane %v327_v63, 1  ;;  %562 = vrot.lane.b32.xlu1 %v524_v44, %s700_s14  ;;  %v481_v17 = vsel %vm461_vm4, %v478_v45, %v480_v2 }
 0x11d   :  { %v385_v4 = vrot.slane %v328_v1, 1  ;;  %v225_v6 = vpop.permute.xlu0 %224  ;;  %v484_v37 = vsel %vm461_vm4, %v482_v50, %v483_v10  ;;  %v241_v7 = vpop.permute.xlu2 %240 }
 0x11e   :  { %v282_v8 = vsub.f32 %v812_v46, %v225_v6  ;;  %v227_v9 = vpop.permute.xlu1 %226  ;;  %v384_v43 = vsel %vm364_vm3, %v381_v26, %v383_v28  ;;  %v290_v45 = vsub.f32 %v850_v56, %v241_v7 }
 0x11f   :  { %v387_v11 = vsel %vm364_vm3, %v385_v4, %v386_v60  ;;  %v283_v12 = vsub.f32 %v816_v48, %v227_v9  ;;  %v428_v13 = vadd.f32 %v384_v43, %v878_v5  ;;  %v920_v48 = vmul.f32 0.125, %v287_v14 }
 0x120   :  { %v429_v15 = vadd.f32 %v387_v11, %v304_v42  ;;  %v306_v16 = vmul.f32 0.125, %v282_v8  ;;  %v314_v32 = vmul.f32 0.125, %v290_v45 }
 0x121   :  { %v307_v46 = vmul.f32 0.125, %v283_v12  ;;  %v525_v19 = vadd.f32 %v481_v17, %v428_v13  ;;  %v335_v36 = vmul.f32 2.0, %v920_v48  ;;  %v493_v2 = vrot.slane %v920_v48, 2 }
 0x122   :  { %v330_v20 = vmul.f32 2.0, %v306_v16  ;;  %v526_v22 = vadd.f32 %v484_v37, %v429_v15  ;;  %v485_v23 = vrot.slane %v306_v16, 2  ;;  %v338_v9 = vmul.f32 2.0, %v314_v32 }
 0x123   :  { %v331_v21 = vmul.f32 2.0, %v307_v46  ;;  %564 = vrot.lane.b32.xlu2 %v525_v19, %s700_s14  ;;  %v487_v25 = vrot.slane %v307_v46, 2  ;;  %v498_v19 = vrot.slane %v314_v32, 2 }
 0x124   :  { %v388_v5 = vrot.slane %v330_v20, 1  ;;  %566 = vrot.lane.b32.xlu0 %v526_v22, %s700_s14  ;;  %v486_v41 = vsel %vm461_vm4, %v483_v10, %v485_v23 }
 0x125   :  { %v390_v24 = vrot.slane %v331_v21, 1  ;;  %v231_v38 = vpop.permute.xlu0 %230  ;;  %v489_v58 = vsel %vm461_vm4, %v487_v25, %v488_v31 }
 0x126   :  { %v285_v27 = vsub.f32 %v824_v49, %v231_v38  ;;  %v233_v26 = vpop.permute.xlu1 %232  ;;  %v389_v30 = vsel %vm364_vm3, %v386_v60, %v388_v5 }
 0x127   :  { %v392_v47 = vsel %vm364_vm3, %v390_v24, %v391_v53  ;;  %v286_v34 = vsub.f32 %v828_v51, %v233_v26  ;;  %v430_v35 = vadd.f32 %v389_v30, %v892_v29  ;;  %v396_v29 = vrot.slane %v335_v36, 1 }
 0x128   :  { %v431_v39 = vadd.f32 %v392_v47, %v307_v46  ;;  %v309_v40 = vmul.f32 0.125, %v285_v27 }
 0x129   :  { %v310_v49 = vmul.f32 0.125, %v286_v34  ;;  %v527_v57 = vadd.f32 %v486_v41, %v430_v35 }
 0x12a   :  { %v333_v59 = vmul.f32 2.0, %v309_v40  ;;  %v528_v61 = vadd.f32 %v489_v58, %v431_v39  ;;  %v490_v42 = vrot.slane %v309_v40, 2 }
 0x12b   :  { %v334_v62 = vmul.f32 2.0, %v310_v49  ;;  %568 = vrot.lane.b32.xlu1 %v527_v57, %s700_s14  ;;  %v492_v0 = vrot.slane %v310_v49, 2 }
 0x12c   :  { %v393_v51 = vrot.slane %v333_v59, 1  ;;  %570 = vrot.lane.b32.xlu2 %v528_v61, %s700_s14  ;;  %v491_v8 = vsel %vm461_vm4, %v488_v31, %v490_v42 }
 0x12d   :  { %v395_v63 = vrot.slane %v334_v62, 1  ;;  %v237_v1 = vpop.permute.xlu0 %236 }
 0x12e   :  { %v288_v56 = vsub.f32 %v836_v52, %v237_v1  ;;  %v239_v44 = vpop.permute.xlu1 %238  ;;  %v394_v28 = vsel %vm364_vm3, %v391_v53, %v393_v51  ;;  %v494_v52 = vsel %vm461_vm4, %v492_v0, %v493_v2 }
 0x12f   :  { %v397_v33 = vsel %vm364_vm3, %v395_v63, %v396_v29  ;;  %v289_v60 = vsub.f32 %v840_v54, %v239_v44  ;;  %v432_v4 = vadd.f32 %v394_v28, %v906_v3  ;;  %v401_v54 = vrot.slane %v338_v9, 1 }
 0x130   :  { %v433_v6 = vadd.f32 %v397_v33, %v310_v49  ;;  %v312_v50 = vmul.f32 0.125, %v288_v56 }
 0x131   :  { %v313_v43 = vmul.f32 0.125, %v289_v60  ;;  %v529_v10 = vadd.f32 %v491_v8, %v432_v4 }
 0x132   :  { %v336_v11 = vmul.f32 2.0, %v312_v50  ;;  %v530_v12 = vadd.f32 %v494_v52, %v433_v6  ;;  %v495_v15 = vrot.slane %v312_v50, 2 }
 0x133   :  { %v337_v13 = vmul.f32 2.0, %v313_v43  ;;  %572 = vrot.lane.b32.xlu0 %v529_v10, %s700_s14  ;;  %v497_v16 = vrot.slane %v313_v43, 2 }
 0x134   :  { %v398_v14 = vrot.slane %v336_v11, 1  ;;  %574 = vrot.lane.b32.xlu1 %v530_v12, %s700_s14  ;;  %v496_v5 = vsel %vm461_vm4, %v493_v2, %v495_v15 }
 0x135   :  { %v400_v3 = vrot.slane %v337_v13, 1  ;;  %v243_v17 = vpop.permute.xlu0 %242  ;;  %v499_v53 = vsel %vm461_vm4, %v497_v16, %v498_v19 }
 0x136   :  { %v291_v18 = vsub.f32 %v848_v55, %v243_v17  ;;  %v399_v46 = vsel %vm364_vm3, %v396_v29, %v398_v14 }
 0x137   :  { %v402_v20 = vsel %vm364_vm3, %v400_v3, %v401_v54  ;;  %v434_v37 = vadd.f32 %v399_v46, %v920_v48 }
 0x138   :  { %v435_v21 = vadd.f32 %v402_v20, %v313_v43  ;;  %v315_v22 = vmul.f32 0.125, %v291_v18 }
 0x139   :  { %v531_v23 = vadd.f32 %v496_v5, %v434_v37 }
 0x13a   :  { %v339_v24 = vmul.f32 2.0, %v315_v22  ;;  %v532_v25 = vadd.f32 %v499_v53, %v435_v21  ;;  %v500_v55 = vrot.slane %v315_v22, 2 }
 0x13b   :  { %576 = vrot.lane.b32.xlu2 %v531_v23, %s700_s14 }
 0x13c   :  { %v403_v38 = vrot.slane %v339_v24, 1  ;;  %578 = vrot.lane.b32.xlu0 %v532_v25, %s700_s14  ;;  %v501_v48 = vsel %vm461_vm4, %v498_v19, %v500_v55 }
 0x13e   :  { %v404_v7 = vsel %vm364_vm3, %v401_v54, %v403_v38 }
 0x13f   :  { %v436_v27 = vadd.f32 %v404_v7, %v314_v32 }
 0x141   :  { %v533_v26 = vadd.f32 %v501_v48, %v436_v27 }
 0x143   :  { %580 = vrot.lane.b32.xlu1 %v533_v26, %s700_s14 }
 0x165   :  { %v553_v30 = vpop.permute.xlu2 %552 }
 0x166   :  { %600 = vst.msk [vmem:[#allocation6 + $0x8] sm:$0xff] %vm598_vm5, %v553_v30 }
 0x16e   :  { %v559_v31 = vpop.permute.xlu2 %558 }
 0x16f   :  { %603 = vst.msk [vmem:[#allocation6 + $0x20] sm:$0xff] %vm598_vm5, %v559_v31 }
 0x175   :  { %v551_v47 = vpop.permute.xlu1 %550 }
 0x176   :  { %599 = vst.msk [vmem:[#allocation6] sm:$0xff] %vm598_vm5, %v551_v47 }
 0x17d   :  { %v565_v34 = vpop.permute.xlu2 %564 }
 0x17e   :  { %606 = vst.msk [vmem:[#allocation6 + $0x38] sm:$0xff] %vm598_vm5, %v565_v34  ;;  %v555_v35 = vpop.permute.xlu0 %554 }
 0x17f   :  { %601 = vst.msk [vmem:[#allocation6 + $0x10] sm:$0xff] %vm598_vm5, %v555_v35 }
 0x185   :  { %v557_v36 = vpop.permute.xlu1 %556 }
 0x186   :  { %v571_v39 = vpop.permute.xlu2 %570  ;;  %602 = vst.msk [vmem:[#allocation6 + $0x18] sm:$0xff] %vm598_vm5, %v557_v36 }
 0x187   :  { %609 = vst.msk [vmem:[#allocation6 + $0x50] sm:$0xff] %vm598_vm5, %v571_v39 }
 0x18d   :  { %v561_v40 = vpop.permute.xlu0 %560 }
 0x18e   :  { %604 = vst.msk [vmem:[#allocation6 + $0x28] sm:$0xff] %vm598_vm5, %v561_v40  ;;  %v563_v41 = vpop.permute.xlu1 %562 }
 0x18f   :  { %605 = vst.msk [vmem:[#allocation6 + $0x30] sm:$0xff] %vm598_vm5, %v563_v41 }
 0x195   :  { %v577_v45 = vpop.permute.xlu2 %576 }
 0x196   :  { %612 = vst.msk [vmem:[#allocation6 + $0x68] sm:$0xff] %vm598_vm5, %v577_v45  ;;  %v567_v49 = vpop.permute.xlu0 %566 }
 0x197   :  { %607 = vst.msk [vmem:[#allocation6 + $0x40] sm:$0xff] %vm598_vm5, %v567_v49 }
 0x19d   :  { %v569_v57 = vpop.permute.xlu1 %568 }
 0x19e   :  { %608 = vst.msk [vmem:[#allocation6 + $0x48] sm:$0xff] %vm598_vm5, %v569_v57 }
 0x1a5   :  { %v573_v58 = vpop.permute.xlu0 %572 }
 0x1a6   :  { %610 = vst.msk [vmem:[#allocation6 + $0x58] sm:$0xff] %vm598_vm5, %v573_v58  ;;  %v575_v59 = vpop.permute.xlu1 %574 }
 0x1a7   :  { %611 = vst.msk [vmem:[#allocation6 + $0x60] sm:$0xff] %vm598_vm5, %v575_v59 }
 0x1ae   :  { %v579_v61 = vpop.permute.xlu0 %578 }
 0x1af   :  { %613 = vst.msk [vmem:[#allocation6 + $0x70] sm:$0xff] %vm598_vm5, %v579_v61 }
 0x1b5   :  { %v581_v62 = vpop.permute.xlu1 %580 }
 0x1b6   :  { %614 = vst.msk [vmem:[#allocation6 + $0x78] sm:$0xff] %vm598_vm5, %v581_v62 }
 0x1b7   :  { %627 = dma.vmem_to_hbm [thread:$0]  %s620_s16, 2048, %s622_s19, [#allocation5], %s695_s11, %s695_s11, %s696_s12  }
 0x1b8   :  { %692 = dma.done.wait [#allocation5], 2048  }
 0x1b9   :  { %693 = vsyncadd [#allocation5], 4294965248 }
 0x1ba   :  { %632 = vsyncpa [#allocation4], 1 }
 0x1bb   :  { %633 = vsyncpa [#allocation5], 1 }

</bundles_post_ra>
